<compile_context>
chip_gen: v7x
topology: tpu7x:2x2x1
jax: 0.10.0
libtpu: 0.0.40
codegen_flags: <defaults>
</compile_context>

<pallas_src>
import functools

import jax
import jax.numpy as jnp
from jax.experimental import pallas as pl
from jax.experimental.pallas import tpu as pltpu


def _round_up(x, m):
    return (x + m - 1) // m * m


def _mlp_kernel(x_ref, w1_ref, b1_ref, w2_ref, b2_ref, w3_ref, b3_ref, o_ref):
    # Layer 1: bf16 x bf16 -> f32 accumulate on the MXU; bias/ReLU in f32 on the VPU
    # (v5e has no bf16 VPU, so the elementwise epilogue stays f32 on all generations).
    h1 = jnp.dot(x_ref[...], w1_ref[...], preferred_element_type=jnp.float32)
    h1 = jnp.maximum(h1 + b1_ref[...], 0.0)
    # Layer 2 (cast activation back to the weight dtype to keep the MXU at bf16 rate).
    h2 = jnp.dot(h1.astype(w2_ref.dtype), w2_ref[...],
                 preferred_element_type=jnp.float32)
    h2 = jnp.maximum(h2 + b2_ref[...], 0.0)
    # Layer 3 (lane-dense 128-wide padded output; padding sliced off in the wrapper).
    o = jnp.dot(h2.astype(w3_ref.dtype), w3_ref[...],
                preferred_element_type=jnp.float32) + b3_ref[...]
    o_ref[...] = o.astype(o_ref.dtype)


def prepare_params(w1, b1, w2, b2, w3, b3, *, use_bf16=True):
    """Pad every feature dim to a multiple of 128 and cast weights to bf16 -- ONCE.

    Returns (padded_params_tuple, output_size). Do this at init / load time and reuse
    the result for every forward call; re-padding per call dominated latency before.
    """
    in_sz, hid = w1.shape
    out_sz = w3.shape[1]
    in_p = _round_up(in_sz, 128)     # 784 -> 896 (kept at 7x128; never pad K further)
    hid_p = _round_up(hid, 128)      # 128 -> 128
    out_p = _round_up(out_sz, 128)   # 10  -> 128

    wdt = jnp.bfloat16 if use_bf16 else jnp.float32
    f32 = jnp.float32

    w1p = jnp.pad(w1.astype(f32), ((0, in_p - in_sz), (0, hid_p - hid))).astype(wdt)
    w2p = jnp.pad(w2.astype(f32), ((0, hid_p - hid), (0, hid_p - hid))).astype(wdt)
    w3p = jnp.pad(w3.astype(f32), ((0, hid_p - hid), (0, out_p - out_sz))).astype(wdt)
    # Biases stay f32 so the bias+ReLU epilogue is pure f32 on the VPU.
    b1p = jnp.pad(jnp.reshape(b1, (1, -1)).astype(f32), ((0, 0), (0, hid_p - hid)))
    b2p = jnp.pad(jnp.reshape(b2, (1, -1)).astype(f32), ((0, 0), (0, hid_p - hid)))
    b3p = jnp.pad(jnp.reshape(b3, (1, -1)).astype(f32), ((0, 0), (0, out_p - out_sz)))

    return (w1p, b1p, w2p, b2p, w3p, b3p), out_sz


@functools.partial(jax.jit, static_argnames=("out_size", "block_m"))
def simple_net_forward(x, w1p, b1p, w2p, b2p, w3p, b3p, *, out_size, block_m=512):
    """Fused 3-layer MLP forward. Expects pre-padded params from prepare_params()."""
    B, in_sz = x.shape
    in_p, hid_p = w1p.shape
    out_p = w3p.shape[1]
    wdt = w1p.dtype
    f32 = jnp.float32

    # Batch tiling:
    #  * tiny batches: one grid step, 16-row minimum (bf16 sublane packing is (16,128)).
    #  * B > 32: pick bm so the grid has >= 2 steps (both v7x TensorCores get work),
    #    capped at block_m (256-512 keeps the streaming x tile near the HBM roofline
    #    and amortizes the ~0.35 us per-grid-step overhead + MXU fill/drain).
    if B <= 32:
        bm = max(16, _round_up(B, 16))
    else:
        bm = min(block_m, _round_up(pl.cdiv(B, 2), 16))
    B_p = _round_up(B, bm)
    grid = (B_p // bm,)

    # x pad + cast; allow_input_fusion below lets XLA fuse this producer into the
    # kernel's input pipeline rather than materializing a padded HBM copy.
    xp = jnp.pad(x, ((0, B_p - B), (0, in_p - in_sz))).astype(wdt)

    # Cost estimate (advisory).
    flops = 2 * B_p * (in_p * hid_p + hid_p * hid_p + hid_p * out_p)
    w_bytes = jnp.dtype(wdt).itemsize
    bytes_accessed = (
        B_p * in_p * w_bytes
        + (w1p.size + w2p.size + w3p.size) * w_bytes
        + (b1p.size + b2p.size + b3p.size) * 4
        + B_p * out_p * 4
    )

    # Actual VMEM footprint: double-buffered x tile + out tile, resident weights/biases,
    # plus f32 intermediates; generous headroom but far below the 32 MiB scoped default
    # (leaves room on v7x's 64 MiB physical VMEM for fused neighbors).
    vmem_bytes = (
        2 * bm * in_p * w_bytes            # x tile, double-buffered
        + 2 * bm * out_p * 4               # out tile, double-buffered
        + 2 * ((w1p.size + w2p.size + w3p.size) * w_bytes
               + (b1p.size + b2p.size + b3p.size) * 4)   # resident operands (2 bufs)
        + 4 * bm * hid_p * 4               # h1/h2 intermediates + slack
    )
    vmem_limit = max(4 * 1024 * 1024, int(1.5 * vmem_bytes))

    out = pl.pallas_call(
        _mlp_kernel,
        out_shape=jax.ShapeDtypeStruct((B_p, out_p), f32),
        grid_spec=pltpu.PrefetchScalarGridSpec(
            num_scalar_prefetch=0,
            grid=grid,
            in_specs=[
                # x: tiled along the batch axis.
                pl.BlockSpec((bm, in_p), lambda i: (i, 0)),
                # weights / biases: full arrays, constant block index (resident; Pallas
                # does not re-DMA blocks whose index is unchanged across grid steps).
                pl.BlockSpec((in_p, hid_p), lambda i: (0, 0)),
                pl.BlockSpec((1, hid_p), lambda i: (0, 0)),
                pl.BlockSpec((hid_p, hid_p), lambda i: (0, 0)),
                pl.BlockSpec((1, hid_p), lambda i: (0, 0)),
                pl.BlockSpec((hid_p, out_p), lambda i: (0, 0)),
                pl.BlockSpec((1, out_p), lambda i: (0, 0)),
            ],
            out_specs=pl.BlockSpec((bm, out_p), lambda i: (i, 0)),
        ),
        compiler_params=pltpu.CompilerParams(
            dimension_semantics=("parallel",),   # batch tiles shard across TCs on v7x
            vmem_limit_bytes=vmem_limit,
            allow_input_fusion=[True] + [False] * 6,   # fuse the x pad/cast producer
        ),
        cost_estimate=pl.CostEstimate(
            flops=flops, transcendentals=0, bytes_accessed=int(bytes_accessed)),
    )(xp, w1p, b1p, w2p, b2p, w3p, b3p)

    # Slice off batch / output-lane padding.
    return out[:B, :out_size]


def init_params(key, input_size=784, hidden_size=128, output_size=10):
    """Deterministic parameter init (uniform, PyTorch-Linear-style bounds)."""
    ks = jax.random.split(key, 6)

    def lin(kw, kb, fan_in, fan_out):
        bound = 1.0 / jnp.sqrt(fan_in)
        w = jax.random.uniform(kw, (fan_in, fan_out), jnp.float32, -bound, bound)
        b = jax.random.uniform(kb, (1, fan_out), jnp.float32, -bound, bound)
        return w, b

    w1, b1 = lin(ks[0], ks[1], input_size, hidden_size)
    w2, b2 = lin(ks[2], ks[3], hidden_size, hidden_size)
    w3, b3 = lin(ks[4], ks[5], hidden_size, output_size)
    return w1, b1, w2, b2, w3, b3


if __name__ == "__main__":
    key = jax.random.PRNGKey(0)
    k_x, k_p = jax.random.split(key)

    B, INPUT, HIDDEN, OUTPUT = 8, 784, 128, 10
    x = jax.random.normal(k_x, (B, INPUT), dtype=jnp.float32)
    params = init_params(k_p, INPUT, HIDDEN, OUTPUT)

    # Pad + cast the weights ONCE (hoisted out of the per-call path).
    padded_params, out_sz = prepare_params(*params, use_bf16=True)
    padded_params = jax.block_until_ready(padded_params)

    out = simple_net_forward(x, *padded_params, out_size=out_sz)
    out = jax.block_until_ready(out)

    # Pure-JAX f32 reference check of the fused kernel (tolerance loosened for the
    # bf16 MXU inputs; accumulation is f32).
    w1, b1, w2, b2, w3, b3 = params
    ref = jnp.maximum(x @ w1 + b1, 0.0)
    ref = jnp.maximum(ref @ w2 + b2, 0.0)
    ref = ref @ w3 + b3
    assert out.shape == (B, OUTPUT)
    assert jnp.allclose(out, ref, atol=5e-2, rtol=5e-2), float(
        jnp.max(jnp.abs(out - ref)))

    print("KERNEL_OK")
</pallas_src>

<mosaic_0001>
module attributes {stable_mosaic.version = 11 : i64} {
  func.func @_mlp_kernel(%arg0: i32, %arg1: memref<16x896xbf16, #tpu.memory_space<vmem>>, %arg2: memref<896x128xbf16, #tpu.memory_space<vmem>>, %arg3: memref<1x128xf32, #tpu.memory_space<vmem>>, %arg4: memref<128x128xbf16, #tpu.memory_space<vmem>>, %arg5: memref<1x128xf32, #tpu.memory_space<vmem>>, %arg6: memref<128x128xbf16, #tpu.memory_space<vmem>>, %arg7: memref<1x128xf32, #tpu.memory_space<vmem>>, %arg8: memref<16x128xf32, #tpu.memory_space<vmem>>) attributes {dimension_semantics = [#tpu.dimension_semantics<parallel>], iteration_bounds = array<i64: 1>, scalar_prefetch = 0 : i64, scratch_operands = 0 : i64, tpu.core_type = #tpu.core_type<tc>, window_params = [{transform_indices = @transform_0, window_bounds = array<i64: 16, 896>}, {pipeline_mode = #tpu.pipeline_mode<synchronous>, transform_indices = @transform_1, window_bounds = array<i64: 896, 128>}, {pipeline_mode = #tpu.pipeline_mode<synchronous>, transform_indices = @transform_2, window_bounds = array<i64: 1, 128>}, {pipeline_mode = #tpu.pipeline_mode<synchronous>, transform_indices = @transform_3, window_bounds = array<i64: 128, 128>}, {pipeline_mode = #tpu.pipeline_mode<synchronous>, transform_indices = @transform_4, window_bounds = array<i64: 1, 128>}, {pipeline_mode = #tpu.pipeline_mode<synchronous>, transform_indices = @transform_5, window_bounds = array<i64: 128, 128>}, {pipeline_mode = #tpu.pipeline_mode<synchronous>, transform_indices = @transform_6, window_bounds = array<i64: 1, 128>}, {transform_indices = @transform_7, window_bounds = array<i64: 16, 128>}]} {
    %c0 = arith.constant 0 : index
    %c0_0 = arith.constant 0 : index
    %0 = vector.load %arg1[%c0, %c0_0] : memref<16x896xbf16, #tpu.memory_space<vmem>>, vector<16x896xbf16>
    %c0_1 = arith.constant 0 : index
    %c0_2 = arith.constant 0 : index
    %1 = vector.load %arg2[%c0_1, %c0_2] : memref<896x128xbf16, #tpu.memory_space<vmem>>, vector<896x128xbf16>
    %cst = arith.constant dense<0.000000e+00> : vector<16x128xf32>
    %2 = tpu.matmul %0, %1, %cst {dimension_numbers = #tpu.dot_dimension_numbers<[1], [0], [0], [1], [0, 0, 1, 1], [], []>} : vector<16x896xbf16>, vector<896x128xbf16>, vector<16x128xf32> -> vector<16x128xf32>
    %c0_3 = arith.constant 0 : index
    %c0_4 = arith.constant 0 : index
    %3 = vector.load %arg3[%c0_3, %c0_4] : memref<1x128xf32, #tpu.memory_space<vmem>>, vector<1x128xf32>
    %4 = vector.broadcast %3 : vector<1x128xf32> to vector<16x128xf32>
    %5 = arith.addf %2, %4 : vector<16x128xf32>
    %cst_5 = arith.constant 0.000000e+00 : f32
    %6 = vector.broadcast %cst_5 : f32 to vector<16x128xf32>
    %7 = arith.maximumf %5, %6 : vector<16x128xf32>
    %8 = arith.truncf %7 : vector<16x128xf32> to vector<16x128xbf16>
    %c0_6 = arith.constant 0 : index
    %c0_7 = arith.constant 0 : index
    %9 = vector.load %arg4[%c0_6, %c0_7] : memref<128x128xbf16, #tpu.memory_space<vmem>>, vector<128x128xbf16>
    %cst_8 = arith.constant dense<0.000000e+00> : vector<16x128xf32>
    %10 = tpu.matmul %8, %9, %cst_8 {dimension_numbers = #tpu.dot_dimension_numbers<[1], [0], [0], [1], [0, 0, 1, 1], [], []>} : vector<16x128xbf16>, vector<128x128xbf16>, vector<16x128xf32> -> vector<16x128xf32>
    %c0_9 = arith.constant 0 : index
    %c0_10 = arith.constant 0 : index
    %11 = vector.load %arg5[%c0_9, %c0_10] : memref<1x128xf32, #tpu.memory_space<vmem>>, vector<1x128xf32>
    %12 = vector.broadcast %11 : vector<1x128xf32> to vector<16x128xf32>
    %13 = arith.addf %10, %12 : vector<16x128xf32>
    %cst_11 = arith.constant 0.000000e+00 : f32
    %14 = vector.broadcast %cst_11 : f32 to vector<16x128xf32>
    %15 = arith.maximumf %13, %14 : vector<16x128xf32>
    %16 = arith.truncf %15 : vector<16x128xf32> to vector<16x128xbf16>
    %c0_12 = arith.constant 0 : index
    %c0_13 = arith.constant 0 : index
    %17 = vector.load %arg6[%c0_12, %c0_13] : memref<128x128xbf16, #tpu.memory_space<vmem>>, vector<128x128xbf16>
    %cst_14 = arith.constant dense<0.000000e+00> : vector<16x128xf32>
    %18 = tpu.matmul %16, %17, %cst_14 {dimension_numbers = #tpu.dot_dimension_numbers<[1], [0], [0], [1], [0, 0, 1, 1], [], []>} : vector<16x128xbf16>, vector<128x128xbf16>, vector<16x128xf32> -> vector<16x128xf32>
    %c0_15 = arith.constant 0 : index
    %c0_16 = arith.constant 0 : index
    %19 = vector.load %arg7[%c0_15, %c0_16] : memref<1x128xf32, #tpu.memory_space<vmem>>, vector<1x128xf32>
    %20 = vector.broadcast %19 : vector<1x128xf32> to vector<16x128xf32>
    %21 = arith.addf %18, %20 : vector<16x128xf32>
    %c0_17 = arith.constant 0 : index
    %c0_18 = arith.constant 0 : index
    %22 = vector.load %arg8[%c0_17, %c0_18] : memref<16x128xf32, #tpu.memory_space<vmem>>, vector<16x128xf32>
    tpu.vector_store %arg8[%c0_17, %c0_18], %21 {strides = array<i32>} : memref<16x128xf32, #tpu.memory_space<vmem>>, vector<16x128xf32>,
    return
  }
  func.func @transform_0(%arg0: i32) -> (i32, i32) {
    %c0_i32 = arith.constant 0 : i32
    %c0_i32_0 = arith.constant 0 : i32
    return %arg0, %c0_i32 : i32, i32
  }
  func.func @transform_1(%arg0: i32) -> (i32, i32) {
    %c0_i32 = arith.constant 0 : i32
    %c0_i32_0 = arith.constant 0 : i32
    %c0_i32_1 = arith.constant 0 : i32
    return %c0_i32, %c0_i32_0 : i32, i32
  }
  func.func @transform_2(%arg0: i32) -> (i32, i32) {
    %c0_i32 = arith.constant 0 : i32
    %c0_i32_0 = arith.constant 0 : i32
    %c0_i32_1 = arith.constant 0 : i32
    return %c0_i32, %c0_i32_0 : i32, i32
  }
  func.func @transform_3(%arg0: i32) -> (i32, i32) {
    %c0_i32 = arith.constant 0 : i32
    %c0_i32_0 = arith.constant 0 : i32
    %c0_i32_1 = arith.constant 0 : i32
    return %c0_i32, %c0_i32_0 : i32, i32
  }
  func.func @transform_4(%arg0: i32) -> (i32, i32) {
    %c0_i32 = arith.constant 0 : i32
    %c0_i32_0 = arith.constant 0 : i32
    %c0_i32_1 = arith.constant 0 : i32
    return %c0_i32, %c0_i32_0 : i32, i32
  }
  func.func @transform_5(%arg0: i32) -> (i32, i32) {
    %c0_i32 = arith.constant 0 : i32
    %c0_i32_0 = arith.constant 0 : i32
    %c0_i32_1 = arith.constant 0 : i32
    return %c0_i32, %c0_i32_0 : i32, i32
  }
  func.func @transform_6(%arg0: i32) -> (i32, i32) {
    %c0_i32 = arith.constant 0 : i32
    %c0_i32_0 = arith.constant 0 : i32
    %c0_i32_1 = arith.constant 0 : i32
    return %c0_i32, %c0_i32_0 : i32, i32
  }
  func.func @transform_7(%arg0: i32) -> (i32, i32) {
    %c0_i32 = arith.constant 0 : i32
    %c0_i32_0 = arith.constant 0 : i32
    return %arg0, %c0_i32 : i32, i32
  }
}

</mosaic_0001>

<bundles_post_ra>
// kernel: simple_net_forward.2
= control target key start
LH: loop header
LB: loop body
LE: loop exit
PB: predicated region body
PF: predicated region fallthrough
CT: control target
= control target key end

     0   :  { %s1712_s0 = inlined_call_operand.hbm [shape: bf16[896,128], index: 0, kind: input, shape index: {}]   ;;  %s1713_s1 = inlined_call_operand.vmem [shape: f32[1,128], index: 1, kind: input, shape index: {}]   ;;  %s1714_s2 = inlined_call_operand.vmem [shape: bf16[128,128], index: 2, kind: input, shape index: {}]   ;;  %s1715_s3 = inlined_call_operand.vmem [shape: f32[1,128], index: 3, kind: input, shape index: {}]   ;;  %s1716_s4 = inlined_call_operand.hbm [shape: bf16[128,128], index: 4, kind: input, shape index: {}]   ;;  %s1717_s5 = inlined_call_operand.vmem [shape: f32[1,128], index: 5, kind: input, shape index: {}]   ;;  %s1718_s6 = inlined_call_operand.vmem [shape: bf16[8,784], index: 6, kind: input, shape index: {}]   ;;  %s1719_s7 = inlined_call_operand.<no memory space> [shape: bf16[], index: 7, kind: input, shape index: {}]   ;;  %s1720_s8 = inlined_call_operand.vmem [shape: f32[16,128], index: 8, kind: output, shape index: {}]  }
   0x1   :  { %v13_v0 = vstv %s1719_s7 }
   0x2   :  { %v1601_v1 = vunpack.i.l.bf16 %v13_v0 }
   0x3   :  { %18 = vsyncpa [#allocation8], 0 }
   0x4   :  { %19 = vsyncpa [#allocation10], 0  ;;  %s1547_s29 = smov [#allocation7]   ;;  %s1499_s11 = scalar_lea.hbm %s1712_s0, 7168 }
   0x5   :  { %s27_s30 = sshll.u32 %s1547_s29, 4  ;;  %p1500_p0 = scmp.ne.s32.totalorder %s1712_s0, %s1499_s11  ;;  %s28_s30 = int_to_ptr.vmem [resolvable:$true] %s27_s30 }
   0x6   :  { %p1503_p1 = scmp.lt.u32.totalorder %s1499_s11, %s1712_s0 }
   0x8   :  { %p1505_p2 = pnand %p1503_p1, %p1500_p0 }
   0xa   :  { %1508 = shalt.err (!%p1505_p2)
}
   0xb   :  { %s1509_s7 = scalar_lea.vmem %s28_s30, 7168  ;;  %p1514_p4 = scmp.lt.s32.totalorder %s28_s30, %s28_s30 }
   0xc   :  { %p1510_p3 = scmp.ne.s32.totalorder %s28_s30, %s1509_s7  ;;  %p1515_p5 = scmp.lt.s32.totalorder %s1509_s7, %s1509_s7 }
   0xe   :  { %p1516_p6 = por %p1515_p5, %p1514_p4 }
  0x10   :  { %p1517_p7 = pnand %p1516_p6, %p1510_p3 }
  0x12   :  { %1520 = shalt.err (!%p1517_p7)
}
  0x13   :  { %s1548_s16 = smov 64   ;;  %s1549_s17 = smov 4  }
  0x14   :  { %33 = dma.hbm_to_vmem [thread:$0]  %s1712_s0, 7168, %s28_s30, [#allocation8], %s1548_s16, %s1548_s16, %s1549_s17  }
  0x15   :  { %s1550_s20 = smov [#allocation9]   ;;  %s1521_s24 = scalar_lea.hbm %s1716_s4, 1024 }
  0x16   :  { %s45_s21 = sshll.u32 %s1550_s20, 4  ;;  %p1522_p8 = scmp.ne.s32.totalorder %s1716_s4, %s1521_s24  ;;  %s46_s21 = int_to_ptr.vmem [resolvable:$true] %s45_s21 }
  0x17   :  { %p1525_p9 = scmp.lt.u32.totalorder %s1521_s24, %s1716_s4 }
  0x19   :  { %p1527_p10 = pnand %p1525_p9, %p1522_p8 }
  0x1b   :  { %1530 = shalt.err (!%p1527_p10)
}
  0x1c   :  { %s1531_s29 = scalar_lea.vmem %s46_s21, 1024  ;;  %p1536_p12 = scmp.lt.s32.totalorder %s46_s21, %s46_s21 }
  0x1d   :  { %p1532_p11 = scmp.ne.s32.totalorder %s46_s21, %s1531_s29  ;;  %p1537_p13 = scmp.lt.s32.totalorder %s1531_s29, %s1531_s29 }
  0x1f   :  { %p1538_p0 = por %p1537_p13, %p1536_p12 }
  0x21   :  { %p1539_p1 = pnand %p1538_p0, %p1532_p11 }
  0x23   :  { %1542 = shalt.err (!%p1539_p1)
}
  0x24   :  { %51 = dma.hbm_to_vmem [thread:$0]  %s1716_s4, 1024, %s46_s21, [#allocation10], %s1548_s16, %s1548_s16, %s1549_s17  }
  0x25   :  { %1543 = dma.done.wait [#allocation8], 7168  }
  0x26   :  { %1544 = vsyncadd [#allocation8], 4294960128 }
  0x27   :  { %1545 = dma.done.wait [#allocation10], 1024  }
  0x28   :  { %1546 = vsyncadd [#allocation10], 4294966272  ;;  %v1248_v2 = vpack.c.bf16 %v1601_v1, %v1601_v1  ;;  %v1421_v3 = vld [vmem:[#allocation7 + $0x40] sm:$0xff]   ;;  %v1425_v7 = vld [vmem:[#allocation7 + $0x48] sm:$0xff]   ;;  %v203_v23 = vlaneseq  ;;  %v1551_v46 = vmov 0.0   ;;  %vm1552_vm1 = vmmov 0  }
  0x29   :  { %v1422_v4 = vld [vmem:[#allocation7] sm:$0xff]   ;;  %1262 = vmatprep.subr.bf16.mxu0 %v1421_v3  ;;  %v1426_v8 = vld [vmem:[#allocation7 + $0x8] sm:$0xff]   ;;  %v1429_v11 = vld [vmem:[#allocation7 + $0x50] sm:$0xff]  }
  0x2a   :  { %1249 = vst [vmem:[#allocation11 + $0x20] sm:$0xff] %v1248_v2   ;;  %1254 = vst [vmem:[#allocation11 + $0x28] sm:$0xff] %v1248_v2   ;;  %v1423_v5 = vld [vmem:[#allocation7 + $0xc0] sm:$0xff]   ;;  %1263 = vmatpush3.bf16.msra.mxu0 %v1422_v4  ;;  %v1427_v9 = vld [vmem:[#allocation7 + $0xc8] sm:$0xff]   ;;  %v204_v28 = vand.u32 127, %v203_v23 }
  0x2b   :  { %1259 = vst [vmem:[#allocation11 + $0x30] sm:$0xff] %v1248_v2   ;;  %v1424_v6 = vld [vmem:[#allocation7 + $0x80] sm:$0xff]   ;;  %1284 = vmatprep.subr.bf16.mxu1 %v1423_v5  ;;  %1264 = vmatprep.subr.bf16.mxu0 %v1425_v7  ;;  %v1428_v10 = vld [vmem:[#allocation7 + $0x88] sm:$0xff]   ;;  %v1430_v12 = vld [vmem:[#allocation7 + $0x10] sm:$0xff]  }
  0x2c   :  { %1285 = vmatpush3.bf16.msra.mxu1 %v1424_v6  ;;  %v1431_v13 = vld [vmem:[#allocation7 + $0xd0] sm:$0xff]   ;;  %v1433_v15 = vld [vmem:[#allocation7 + $0x58] sm:$0xff]   ;;  %v1437_v19 = vld [vmem:[#allocation7 + $0x60] sm:$0xff]   ;;  %v205_v33 = vadd.s32 768, %v204_v28 }
  0x2d   :  { %1286 = vmatprep.subr.bf16.mxu1 %v1427_v9  ;;  %v1432_v14 = vld [vmem:[#allocation7 + $0x90] sm:$0xff]   ;;  %v1434_v16 = vld [vmem:[#allocation7 + $0x18] sm:$0xff]   ;;  %v1438_v20 = vld [vmem:[#allocation7 + $0x20] sm:$0xff]  }
  0x2e   :  { %1265 = vmatpush3.bf16.msra.mxu0 %v1426_v8  ;;  %v1435_v17 = vld [vmem:[#allocation7 + $0xd8] sm:$0xff]   ;;  %v1439_v21 = vld [vmem:[#allocation7 + $0xe0] sm:$0xff]   ;;  %v1441_v24 = vld [vmem:[#allocation7 + $0x68] sm:$0xff]   ;;  %vm206_vm0 = vcmp.lt.s32.totalorder %v205_v33, 784 }
  0x2f   :  { %1266 = vmatprep.subr.bf16.mxu0 %v1429_v11  ;;  %v1436_v18 = vld [vmem:[#allocation7 + $0x98] sm:$0xff]   ;;  %v1440_v22 = vld [vmem:[#allocation7 + $0xa0] sm:$0xff]   ;;  %v1442_v25 = vld [vmem:[#allocation7 + $0x28] sm:$0xff]  }
  0x30   :  { %1287 = vmatpush3.bf16.msra.mxu1 %v1428_v10  ;;  %v1443_v26 = vld [vmem:[#allocation7 + $0xe8] sm:$0xff]   ;;  %v1445_v29 = vld [vmem:[#allocation7 + $0x70] sm:$0xff]   ;;  %v1449_v34 = vld [vmem:[#allocation7 + $0x78] sm:$0xff]  }
  0x31   :  { %1288 = vmatprep.subr.bf16.mxu1 %v1431_v13  ;;  %v1444_v27 = vld [vmem:[#allocation7 + $0xa8] sm:$0xff]   ;;  %v1446_v30 = vld [vmem:[#allocation7 + $0x30] sm:$0xff]   ;;  %v1450_v35 = vld [vmem:[#allocation7 + $0x38] sm:$0xff]  }
  0x32   :  { %1267 = vmatpush3.bf16.msra.mxu0 %v1430_v12  ;;  %v1447_v31 = vld [vmem:[#allocation7 + $0xf0] sm:$0xff]   ;;  %v1451_v36 = vld [vmem:[#allocation7 + $0xf8] sm:$0xff]   ;;  %v69_v37 = vld [vmem:[%s1718_s6] sm:$0xff]  }
  0x33   :  { %1268 = vmatprep.subr.bf16.mxu0 %v1433_v15  ;;  %v1448_v32 = vld [vmem:[#allocation7 + $0xb0] sm:$0xff]   ;;  %v1147_v38 = vld [vmem:[%s1718_s6 + $0x18] sm:$0xf]  ;;  %79 = vst [vmem:[#allocation11] sm:$0xff] %v69_v37   ;;  %v1456_v41 = vld [vmem:[#allocation7 + $0x140] sm:$0xff]  }
  0x34   :  { %1289 = vmatpush3.bf16.msra.mxu1 %v1432_v14  ;;  %v201_v39 = vunpack.c.l.bf16 %v1147_v38  ;;  %v1455_v40 = vld [vmem:[#allocation7 + $0xb8] sm:$0xff]   ;;  %v1457_v43 = vld [vmem:[%s1718_s6 + $0x8] sm:$0xff]   ;;  %v1459_v49 = vld [vmem:[#allocation7 + $0x180] sm:$0xff]  }
  0x35   :  { %1290 = vmatprep.subr.bf16.mxu1 %v1435_v17  ;;  %v246_v44 = vld [vmem:[#allocation11 + $0x24] sm:$0xff]  ;;  %v1465_v52 = vld [vmem:[#allocation7 + $0x190] sm:$0xff]   ;;  %v1468_v57 = vld [vmem:[#allocation7 + $0x198] sm:$0xff]  }
  0x36   :  { %1269 = vmatpush3.bf16.msra.mxu0 %v1434_v16  ;;  %v207_v42 = vsel %vm206_vm0, %v201_v39, %v1601_v1  ;;  %v1151_v47 = vcombine.low %v1457_v43, %v246_v44  ;;  %v1152_v48 = vcombine.high %v1457_v43, %v246_v44  ;;  %v1462_v50 = vld [vmem:[#allocation7 + $0x188] sm:$0xff]   ;;  %v1458_v51 = vld [vmem:[#allocation7 + $0x100] sm:$0xff]   ;;  %v1463_v58 = vld [vmem:[#allocation7 + $0x150] sm:$0xff]  }
  0x37   :  { %1270 = vmatprep.subr.bf16.mxu0 %v1437_v19  ;;  %v1243_v45 = vpack.c.bf16 %v1601_v1, %v207_v42  ;;  %v1460_v55 = vld [vmem:[#allocation7 + $0x148] sm:$0xff]   ;;  %v1464_v59 = vld [vmem:[#allocation7 + $0x110] sm:$0xff]   ;;  %v1471_v60 = vld [vmem:[#allocation7 + $0x1a0] sm:$0xff]  }
  0x38   :  { %1291 = vmatpush3.bf16.msra.mxu1 %v1436_v18  ;;  %813 = vmatprep.mubr.bf16.mxu1 %v1152_v48  ;;  %v1461_v56 = vld [vmem:[#allocation7 + $0x108] sm:$0xff]   ;;  %v1466_v61 = vld [vmem:[#allocation7 + $0x158] sm:$0xff]   ;;  %v1469_v0 = vld [vmem:[#allocation7 + $0x160] sm:$0xff]  }
  0x39   :  { %1292 = vmatprep.subr.bf16.mxu1 %v1439_v21  ;;  %1244 = vst [vmem:[#allocation11 + $0x18] sm:$0xff] %v1243_v45   ;;  %v1467_v62 = vld [vmem:[#allocation7 + $0x118] sm:$0xff]   ;;  %v1474_v63 = vld [vmem:[#allocation7 + $0x1a8] sm:$0xff]   ;;  %v1470_v1 = vld [vmem:[#allocation7 + $0x120] sm:$0xff]  }
  0x3a   :  { %1271 = vmatpush3.bf16.msra.mxu0 %v1438_v20  ;;  %v1454_v54 = vld [vmem:[#allocation11 + $0x4] ss:$28 sps:$4 sm:$0xff]   ;;  %v1480_v2 = vld [vmem:[%s1718_s6 + $0x10] sm:$0xff]   ;;  %v1472_v5 = vld [vmem:[#allocation7 + $0x168] sm:$0xff]  }
  0x3b   :  { %1272 = vmatprep.subr.bf16.mxu0 %v1441_v24  ;;  %772 = vmatprep.mubr.bf16.mxu0 %v1454_v54  ;;  %v247_v3 = vld [vmem:[#allocation11 + $0x2c] sm:$0xff]  ;;  %v1481_v8 = vld [vmem:[#allocation7 + $0x1b8] sm:$0xff]   ;;  %v1483_v15 = vld [vmem:[%s1714_s2] sm:$0xff]  }
  0x3c   :  { %1293 = vmatpush3.bf16.msra.mxu1 %v1440_v22  ;;  %v1477_v4 = vld [vmem:[#allocation7 + $0x1b0] sm:$0xff]   ;;  %v1154_v6 = vcombine.high %v1480_v2, %v247_v3  ;;  %v1473_v7 = vld [vmem:[#allocation7 + $0x128] sm:$0xff]   ;;  %v1478_v12 = vld [vmem:[#allocation7 + $0x178] sm:$0xff]   ;;  %v1153_v14 = vcombine.low %v1480_v2, %v247_v3 }
  0x3d   :  { %1294 = vmatprep.subr.bf16.mxu1 %v1443_v26  ;;  %v1475_v9 = vld [vmem:[#allocation7 + $0x170] sm:$0xff]   ;;  %v1479_v13 = vld [vmem:[#allocation7 + $0x138] sm:$0xff]   ;;  %v1484_v16 = vld [vmem:[%s1714_s2 + $0x8] sm:$0xff]  }
  0x3e   :  { %1273 = vmatpush3.bf16.msra.mxu0 %v1442_v25  ;;  %v1476_v11 = vld [vmem:[#allocation7 + $0x130] sm:$0xff]   ;;  %v1486_v18 = vld [vmem:[%s1714_s2 + $0x18] sm:$0xff]   ;;  %v1487_v19 = vld [vmem:[%s1714_s2 + $0x20] sm:$0xff]  }
  0x3f   :  { %1274 = vmatprep.subr.bf16.mxu0 %v1445_v29  ;;  %v1485_v17 = vld [vmem:[%s1714_s2 + $0x10] sm:$0xff]   ;;  %v1488_v20 = vld [vmem:[%s1714_s2 + $0x28] sm:$0xff]   ;;  %v1490_v22 = vld [vmem:[%s1714_s2 + $0x38] sm:$0xff]  }
  0x40   :  { %1295 = vmatpush3.bf16.msra.mxu1 %v1444_v27  ;;  %v1452_v53 = vld [vmem:[#allocation11] ss:$28 sps:$4 sm:$0xff]   ;;  %v1482_v10 = vld [vmem:[#allocation11 + $0x18] ss:$28 sps:$4 sm:$0xff]   ;;  %v1492_v24 = vld [vmem:[#allocation9 + $0x8] sm:$0xff]  }
  0x41   :  { %1296 = vmatprep.subr.bf16.mxu1 %v1447_v31  ;;  %v1489_v21 = vld [vmem:[%s1714_s2 + $0x30] sm:$0xff]   ;;  %v1491_v23 = vld [vmem:[#allocation9] sm:$0xff]   ;;  %v1494_v26 = vld [vmem:[#allocation9 + $0x18] sm:$0xff]  }
  0x42   :  { %1275 = vmatpush3.bf16.msra.mxu0 %v1446_v30  ;;  %v1493_v25 = vld [vmem:[#allocation9 + $0x10] sm:$0xff]   ;;  %v1495_v27 = vld [vmem:[#allocation9 + $0x20] sm:$0xff]   ;;  %v1496_v28 = vld [vmem:[#allocation9 + $0x28] sm:$0xff]  }
  0x43   :  { %1276 = vmatprep.subr.bf16.mxu0 %v1449_v34  ;;  %v1212_v2 = vld [vmem:[%s1715_s3] ss:$0 sm:$0xff] }
  0x44   :  { %1297 = vmatpush3.bf16.msra.mxu1 %v1448_v32 }
  0x45   :  { %1298 = vmatprep.subr.bf16.mxu1 %v1451_v36  ;;  %v1148_v36 = vld [vmem:[%s1713_s1] ss:$0 sm:$0xff] }
  0x46   :  { %1277 = vmatpush3.bf16.msra.mxu0 %v1450_v35 }
  0x47   :  { %1306 = vmatprep.subr.bf16.mxu0 %v1456_v41 }
  0x48   :  { %1299 = vmatpush3.bf16.msra.mxu1 %v1455_v40 }
  0x49   :  { %1355 = vmatprep.subr.bf16.mxu1 %v1551_v46  ;;  %773 = vmatmul.mubr.bf16.vlgmr.msra.gmra.mrb[0].mxu0 %v1452_v53 }
  0x4a   :  { %1307 = vmatpush3.bf16.msra.mxu0 %v1458_v51  ;;  %854 = vmatprep.mubr.bf16.mxu0 %v1154_v6 }
  0x4b   :  { %814 = vmatmul.mubr.bf16.vlgmr.msra.gmra.mrb[0].mxu1 %v1151_v47  ;;  %1308 = vmatprep.subr.bf16.mxu0 %v1460_v55 }
  0x4c   :  { %1356 = vmatpush3.bf16.msra.mxu1 %v1459_v49  ;;  %1371 = vmatprep.mubr.msk.bf16.mxu1 %vm1552_vm1, %v1551_v46 }
  0x4d   :  { %1357 = vmatprep.subr.bf16.mxu1 %v1551_v46 }
  0x4e   :  { %1309 = vmatpush3.bf16.msra.mxu0 %v1461_v56 }
  0x4f   :  { %1310 = vmatprep.subr.bf16.mxu0 %v1463_v58 }
  0x50   :  { %1358 = vmatpush3.bf16.msra.mxu1 %v1462_v50 }
  0x51   :  { %1359 = vmatprep.subr.bf16.mxu1 %v1551_v46 }
  0x52   :  { %1311 = vmatpush3.bf16.msra.mxu0 %v1464_v59 }
  0x53   :  { %1312 = vmatprep.subr.bf16.mxu0 %v1466_v61 }
  0x54   :  { %1360 = vmatpush3.bf16.msra.mxu1 %v1465_v52 }
  0x55   :  { %1361 = vmatprep.subr.bf16.mxu1 %v1551_v46 }
  0x56   :  { %1313 = vmatpush3.bf16.msra.mxu0 %v1467_v62 }
  0x57   :  { %1314 = vmatprep.subr.bf16.mxu0 %v1469_v0  ;;  %v1497_v0 = vld [vmem:[#allocation9 + $0x30] sm:$0xff]  }
  0x58   :  { %1362 = vmatpush3.bf16.msra.mxu1 %v1468_v57 }
  0x59   :  { %1363 = vmatprep.subr.bf16.mxu1 %v1551_v46 }
  0x5a   :  { %1315 = vmatpush3.bf16.msra.mxu0 %v1470_v1  ;;  %v1498_v1 = vld [vmem:[#allocation9 + $0x38] sm:$0xff]  }
  0x5b   :  { %1316 = vmatprep.subr.bf16.mxu0 %v1472_v5 }
  0x5c   :  { %1364 = vmatpush3.bf16.msra.mxu1 %v1471_v60 }
  0x5d   :  { %1365 = vmatprep.subr.bf16.mxu1 %v1551_v46 }
  0x5e   :  { %1317 = vmatpush3.bf16.msra.mxu0 %v1473_v7 }
  0x5f   :  { %1318 = vmatprep.subr.bf16.mxu0 %v1475_v9 }
  0x60   :  { %1366 = vmatpush3.bf16.msra.mxu1 %v1474_v63 }
  0x61   :  { %1367 = vmatprep.subr.bf16.mxu1 %v1551_v46 }
  0x62   :  { %1319 = vmatpush3.bf16.msra.mxu0 %v1476_v11 }
  0x63   :  { %1320 = vmatprep.subr.bf16.mxu0 %v1478_v12 }
  0x64   :  { %1368 = vmatpush3.bf16.msra.mxu1 %v1477_v4 }
  0x65   :  { %1369 = vmatprep.subr.bf16.mxu1 %v1551_v46 }
  0x66   :  { %1321 = vmatpush3.bf16.msra.mxu0 %v1479_v13 }
  0x67   :  { %1375 = vmatprep.subr.bf16.mxu0 %v1551_v46 }
  0x68   :  { %1370 = vmatpush3.bf16.msra.mxu1 %v1481_v8 }
  0x69   :  { %1395 = vmatprep.subr.bf16.mxu1 %v1551_v46  ;;  %855 = vmatmul.mubr.bf16.vlgmr.msra.gmra.mrb[4].mxu0 %v1153_v14 }
  0x6a   :  { %1391 = vmatprep.mubr.msk.bf16.mxu0 %vm1552_vm1, %v1551_v46  ;;  %1376 = vmatpush3.bf16.msra.mxu0 %v1483_v15 }
  0x6b   :  { %1372 = vmatmul.mubr.bf16.vlgmr.msra.gmra.mrb[4].mxu1 %v1482_v10  ;;  %1377 = vmatprep.subr.bf16.mxu0 %v1551_v46 }
  0x6c   :  { %1411 = vmatprep.mubr.msk.bf16.mxu1 %vm1552_vm1, %v1551_v46  ;;  %1396 = vmatpush3.bf16.msra.mxu1 %v1491_v23 }
  0x6d   :  { %1397 = vmatprep.subr.bf16.mxu1 %v1551_v46 }
  0x6e   :  { %1378 = vmatpush3.bf16.msra.mxu0 %v1484_v16 }
  0x6f   :  { %1379 = vmatprep.subr.bf16.mxu0 %v1551_v46 }
  0x70   :  { %1398 = vmatpush3.bf16.msra.mxu1 %v1492_v24 }
  0x71   :  { %1399 = vmatprep.subr.bf16.mxu1 %v1551_v46 }
  0x72   :  { %1380 = vmatpush3.bf16.msra.mxu0 %v1485_v17 }
  0x73   :  { %1381 = vmatprep.subr.bf16.mxu0 %v1551_v46 }
  0x74   :  { %1400 = vmatpush3.bf16.msra.mxu1 %v1493_v25 }
  0x75   :  { %1401 = vmatprep.subr.bf16.mxu1 %v1551_v46 }
  0x76   :  { %1382 = vmatpush3.bf16.msra.mxu0 %v1486_v18 }
  0x77   :  { %1383 = vmatprep.subr.bf16.mxu0 %v1551_v46 }
  0x78   :  { %1402 = vmatpush3.bf16.msra.mxu1 %v1494_v26 }
  0x79   :  { %1403 = vmatprep.subr.bf16.mxu1 %v1551_v46 }
  0x7a   :  { %1384 = vmatpush3.bf16.msra.mxu0 %v1487_v19 }
  0x7b   :  { %1385 = vmatprep.subr.bf16.mxu0 %v1551_v46 }
  0x7c   :  { %1404 = vmatpush3.bf16.msra.mxu1 %v1495_v27 }
  0x7d   :  { %1405 = vmatprep.subr.bf16.mxu1 %v1551_v46 }
  0x7e   :  { %1386 = vmatpush3.bf16.msra.mxu0 %v1488_v20 }
  0x7f   :  { %1387 = vmatprep.subr.bf16.mxu0 %v1551_v46 }
  0x80   :  { %1406 = vmatpush3.bf16.msra.mxu1 %v1496_v28 }
  0x81   :  { %1407 = vmatprep.subr.bf16.mxu1 %v1551_v46 }
  0x82   :  { %1388 = vmatpush3.bf16.msra.mxu0 %v1489_v21 }
  0x83   :  { %1389 = vmatprep.subr.bf16.mxu0 %v1551_v46 }
  0x84   :  { %1408 = vmatpush3.bf16.msra.mxu1 %v1497_v0 }
  0x85   :  { %1409 = vmatprep.subr.bf16.mxu1 %v1551_v46  ;;  %v1221_v46 = vld [vmem:[%s1717_s5] ss:$0 sm:$0xff] }
  0x86   :  { %1390 = vmatpush3.bf16.msra.mxu0 %v1490_v22 }
  0x88   :  { %1410 = vmatpush3.bf16.msra.mxu1 %v1498_v1 }
 0x11c   :  { %v1278_v35 = vpop.f32.mrb[0].mxu0 }
 0x11d   :  { %v1279_v37 = vpop.f32.mrb[1].mxu0 }
 0x11e   :  { %v1300_v29 = vpop.f32.mrb[0].mxu1  ;;  %v1280_v38 = vadd.f32 %v1279_v37, %v1278_v35  ;;  %v1281_v39 = vpop.f32.mrb[2].mxu0 }
 0x11f   :  { %v1301_v30 = vpop.f32.mrb[1].mxu1  ;;  %v1282_v40 = vpop.f32.mrb[3].mxu0 }
 0x120   :  { %v1302_v31 = vadd.f32 %v1301_v30, %v1300_v29  ;;  %v1303_v32 = vpop.f32.mrb[2].mxu1  ;;  %v775_v41 = vadd.f32 %v1280_v38, %v1148_v36  ;;  %v1283_v42 = vadd.f32 %v1282_v40, %v1281_v39 }
 0x121   :  { %v1304_v33 = vpop.f32.mrb[3].mxu1 }
 0x122   :  { %v1305_v34 = vadd.f32 %v1304_v33, %v1303_v32  ;;  %v778_v43 = vadd.f32 %v1283_v42, %v1148_v36  ;;  %v816_v44 = vadd.f32 %v1302_v31, %v775_v41 }
 0x124   :  { %v819_v45 = vadd.f32 %v1305_v34, %v778_v43 }
 0x13c   :  { %v1322_v51 = vpop.f32.mrb[4].mxu0 }
 0x13d   :  { %v1323_v52 = vpop.f32.mrb[5].mxu0 }
 0x13e   :  { %v897_v47 = vpop.f32.mrb[4].mxu1  ;;  %v1324_v53 = vadd.f32 %v1323_v52, %v1322_v51  ;;  %v1325_v54 = vpop.f32.mrb[6].mxu0 }
 0x13f   :  { %v1373_v48 = vpop.f32.mrb[5].mxu1  ;;  %v1326_v55 = vpop.f32.mrb[7].mxu0 }
 0x140   :  { %v900_v49 = vpop.f32.mrb[6].mxu1  ;;  %v857_v56 = vadd.f32 %v1324_v53, %v816_v44  ;;  %v1327_v57 = vadd.f32 %v1326_v55, %v1325_v54 }
 0x141   :  { %v1374_v50 = vpop.f32.mrb[7].mxu1 }
 0x142   :  { %v898_v58 = vadd.f32 %v897_v47, %v857_v56  ;;  %v860_v59 = vadd.f32 %v1327_v57, %v819_v45 }
 0x144   :  { %v901_v60 = vadd.f32 %v900_v49, %v860_v59  ;;  %v904_v61 = vmax.f32 %v898_v58, 0.0 }
 0x146   :  { %v905_v62 = vmax.f32 %v901_v60, 0.0 }
 0x148   :  { %v906_v63 = vpack.c.bf16 %v905_v62, %v904_v61 }
 0x14a   :  { %1392 = vmatmul.mubr.bf16.vlgmr.msra.gmra.mrb[8].mxu0 %v906_v63 }
 0x21d   :  { %v1012_v3 = vpop.f32.mrb[8].mxu0 }
 0x21e   :  { %v1013_v4 = vadd.f32 %v1212_v2, %v1012_v3  ;;  %v1393_v5 = vpop.f32.mrb[9].mxu0 }
 0x21f   :  { %v1015_v6 = vpop.f32.mrb[10].mxu0 }
 0x220   :  { %v1016_v7 = vadd.f32 %v1212_v2, %v1015_v6  ;;  %v1394_v8 = vpop.f32.mrb[11].mxu0  ;;  %v1019_v9 = vmax.f32 %v1013_v4, 0.0 }
 0x222   :  { %v1020_v10 = vmax.f32 %v1016_v7, 0.0 }
 0x224   :  { %v1021_v11 = vpack.c.bf16 %v1020_v10, %v1019_v9 }
 0x226   :  { %1412 = vmatmul.mubr.bf16.vlgmr.msra.gmra.mrb[8].mxu1 %v1021_v11 }
 0x2f9   :  { %v1127_v12 = vpop.f32.mrb[8].mxu1 }
 0x2fa   :  { %v1128_v13 = vadd.f32 %v1221_v46, %v1127_v12  ;;  %v1413_v14 = vpop.f32.mrb[9].mxu1 }
 0x2fb   :  { %v1130_v15 = vpop.f32.mrb[10].mxu1 }
 0x2fc   :  { %1134 = vst [vmem:[%s1720_s8] sm:$0xff] %v1128_v13  ;;  %v1131_v16 = vadd.f32 %v1221_v46, %v1130_v15  ;;  %v1414_v17 = vpop.f32.mrb[11].mxu1 }
 0x2fe   :  { %1135 = vst [vmem:[%s1720_s8 + $0x8] sm:$0xff] %v1131_v16 }
 0x2ff   :  { %1140 = vsyncpa [#allocation8], 1 }
 0x300   :  { %1141 = vsyncpa [#allocation10], 1 }

</bundles_post_ra>
